<compile_context>
chip_gen: v7x
topology: tpu7x:2x2x1
jax: 0.10.0
libtpu: 0.0.40
codegen_flags: <defaults>
</compile_context>

<pallas_src>
import functools

import jax
import jax.numpy as jnp
from jax import lax
from jax.experimental import pallas as pl
from jax.experimental.pallas import tpu as pltpu


VALUE_LANES = 128  # lane-dense slab for the scalar value output (sliced outside)


def _pick_hw_block(hw, cap=2048):
    """Largest multiple of 128 that divides HW (capped); full extent otherwise.

    Block bytes are C*THW*2 (bf16), i.e. a few hundred KB at most — far below
    v7x's 64 MiB VMEM even double-buffered.
    """
    if hw % 128 != 0:
        return hw
    t = 128
    while t * 2 <= min(hw, cap) and hw % (t * 2) == 0:
        t *= 2
    return t


# ----------------------------------------------------------------------------
# Pallas kernel: policy head + global-avg-pool + value MLP, fused & pipelined.
# ----------------------------------------------------------------------------
def value_head_kernel(
    feat_ref,            # (1, C, THW)   bf16  feature tile (channels on sublanes)
    wp_ref,              # (1, C)        bf16  policy 1x1-conv weight
    bp_ref,              # (1,)          f32   policy bias           (SMEM)
    w1_ref,              # (H1, C)       f32   Linear(dim, 4*dim)    (torch [out,in])
    b1_ref,              # (H1, 1)       f32
    w2_ref,              # (H1, H1)      f32   Linear(4*dim, 4*dim)
    b2_ref,              # (H1, 1)       f32
    w3_ref,              # (1, H1)       f32   Linear(4*dim, 1)
    b3_ref,              # (1,)          f32                          (SMEM)
    prob_ref,            # (1, 1, THW)   f32   out: policy logits (HW lane-dense)
    value_ref,           # (1, 1, 128)   f32   out: value, lane-broadcast slab
    acc_ref,             # (C, 1)        f32   scratch: running sum over HW
    *, hw_total,
):
    h_idx = pl.program_id(1)

    @pl.when(h_idx == 0)
    def _init():
        acc_ref[...] = jnp.zeros_like(acc_ref)

    feat = feat_ref[0]                                           # (C, THW) bf16

    # ---- policy 1x1 conv: single MXU contraction over C, HW stays on lanes.
    logits = jnp.dot(wp_ref[...], feat, preferred_element_type=jnp.float32)  # (1, THW)
    prob_ref[0] = logits + bp_ref[0]

    # ---- global-avg-pool partial: sum over this HW tile via MXU matmul vs ones.
    ones_col = jnp.ones((feat.shape[1], 1), dtype=feat.dtype)
    acc_ref[...] += jnp.dot(feat, ones_col, preferred_element_type=jnp.float32)  # (C, 1)

    # ---- finalize on the last HW tile: mean + 3-layer MLP (column form).
    @pl.when(h_idx == pl.num_programs(1) - 1)
    def _finalize():
        pooled = acc_ref[...] * (1.0 / hw_total)                 # (C, 1) f32
        h1 = jnp.dot(w1_ref[...], pooled, preferred_element_type=jnp.float32) + b1_ref[...]
        h1 = jnp.maximum(h1, 0.0)                                # (H1, 1)
        h2 = jnp.dot(w2_ref[...], h1, preferred_element_type=jnp.float32) + b2_ref[...]
        h2 = jnp.maximum(h2, 0.0)                                # (H1, 1)
        v = jnp.dot(w3_ref[...], h2, preferred_element_type=jnp.float32) + b3_ref[0]  # (1, 1)
        value_ref[...] = jnp.broadcast_to(v[:, :, None], value_ref.shape)


def value_head_pallas(feat_c_hw, params):
    """feat_c_hw: [B, C, H*W] float32 (NCHW with spatial dims flattened)."""
    b, c, hw = feat_c_hw.shape
    hidden = params["w1"].shape[0]
    thw = _pick_hw_block(hw)
    hwt = hw // thw

    feat_bf16 = feat_c_hw.astype(jnp.bfloat16)   # fuses into the backbone epilogue
    wp_bf16 = params["wp"].astype(jnp.bfloat16)

    flops = (4 * b * hw * c                       # policy matmul + pooling matmul
             + 2 * b * (c * hidden + hidden * hidden + hidden))
    bytes_accessed = (feat_bf16.size * 2 + b * hw * 4 + b * VALUE_LANES * 4
                      + (c * hidden + hidden * hidden + 2 * hidden + c + 2) * 4)
    cost = pl.CostEstimate(flops=flops, transcendentals=0,
                           bytes_accessed=bytes_accessed)

    grid_spec = pltpu.PrefetchScalarGridSpec(
        num_scalar_prefetch=0,
        grid=(b, hwt),                            # reduction (HW) axis last
        in_specs=[
            pl.BlockSpec((1, c, thw), lambda bi, hi: (bi, 0, hi)),        # feat stream
            pl.BlockSpec((1, c), lambda bi, hi: (0, 0)),                  # wp (resident)
            pl.BlockSpec(memory_space=pltpu.MemorySpace.SMEM),            # bp scalar
            pl.BlockSpec((hidden, c), lambda bi, hi: (0, 0)),             # w1
            pl.BlockSpec((hidden, 1), lambda bi, hi: (0, 0)),             # b1
            pl.BlockSpec((hidden, hidden), lambda bi, hi: (0, 0)),        # w2
            pl.BlockSpec((hidden, 1), lambda bi, hi: (0, 0)),             # b2
            pl.BlockSpec((1, hidden), lambda bi, hi: (0, 0)),             # w3
            pl.BlockSpec(memory_space=pltpu.MemorySpace.SMEM),            # b3 scalar
        ],
        out_specs=(
            pl.BlockSpec((1, 1, thw), lambda bi, hi: (bi, 0, hi)),        # prob (lane-dense)
            pl.BlockSpec((1, 1, VALUE_LANES), lambda bi, hi: (bi, 0, 0)), # value slab
        ),
        scratch_shapes=[pltpu.VMEM((c, 1), jnp.float32)],
    )

    prob3, value3 = pl.pallas_call(
        functools.partial(value_head_kernel, hw_total=hw),
        out_shape=(
            jax.ShapeDtypeStruct((b, 1, hw), jnp.float32),
            jax.ShapeDtypeStruct((b, 1, VALUE_LANES), jnp.float32),
        ),
        grid_spec=grid_spec,
        compiler_params=pltpu.CompilerParams(
            dimension_semantics=("parallel", "arbitrary"),   # B parallel (v7x 2 TCs)
            vmem_limit_bytes=32 * 1024 * 1024,               # safe on v5e/v6e/v7x
        ),
        cost_estimate=cost,
    )(
        feat_bf16,
        wp_bf16, params["bp"],
        params["w1"], params["b1"],
        params["w2"], params["b2"],
        params["w3"], params["b3"],
    )

    prob_out = prob3.reshape(b, hw)
    value_out = value3[:, 0, 0]
    return prob_out, value_out


# ----------------------------------------------------------------------------
# Synthetic `self.module` backbone (external to ValueWrapper) + full forward.
# ----------------------------------------------------------------------------
# TODO(synk): the real `module` is an arbitrary nn.Module; a Conv3x3+ReLU
# backbone with a 1x1-conv policy head stands in for it here.
def value_wrapper_forward(x, params):
    # x: [B, C_in, H, W]  (NCHW, like PyTorch)
    feat = lax.conv_general_dilated(
        x, params["conv_w"], window_strides=(1, 1), padding="SAME",
        dimension_numbers=("NCHW", "OIHW", "NCHW"),
    ) + params["conv_b"][None, :, None, None]
    feat = jax.nn.relu(feat)                               # [B, dim, H, W]

    b, c, h, w = feat.shape
    # No NCHW->NHWC transpose (that would re-read+write the whole feature map).
    # Flattening the spatial dims of NCHW is a free reshape; the kernel
    # consumes [B, C, H*W] directly with HW on the lane axis.
    feat_flat = feat.reshape(b, c, h * w)

    prob_out, value_out = value_head_pallas(feat_flat, params)
    return prob_out, value_out                             # ([B, H*W], [B])


# ----------------------------------------------------------------------------
# Pure-JAX reference for the fused head (same bf16-quantized inputs).
# ----------------------------------------------------------------------------
def value_head_reference(feat_c_hw, params):
    hp = lax.Precision.HIGHEST
    feat = feat_c_hw.astype(jnp.bfloat16).astype(jnp.float32)
    wp = params["wp"].astype(jnp.bfloat16).astype(jnp.float32)
    prob = jnp.einsum("c,bcx->bx", wp[0], feat, precision=hp) + params["bp"][0]
    pooled = jnp.mean(feat, axis=-1)                                        # [B, C]
    h1 = jax.nn.relu(jnp.dot(pooled, params["w1"].T, precision=hp) + params["b1"][:, 0])
    h2 = jax.nn.relu(jnp.dot(h1, params["w2"].T, precision=hp) + params["b2"][:, 0])
    v = jnp.dot(h2, params["w3"].T, precision=hp)[:, 0] + params["b3"][0]   # [B]
    return prob, v


# ----------------------------------------------------------------------------
# Deterministic parameter construction (PyTorch Linear layout: [out, in]).
# ----------------------------------------------------------------------------
def make_params(c_in, dim, widen_factor=4):
    hidden = widen_factor * dim
    keys = jax.random.split(jax.random.PRNGKey(0), 6)
    return {
        # backbone conv: Conv2d(c_in, dim, 3, padding=1)
        "conv_w": jax.random.normal(keys[0], (dim, c_in, 3, 3), jnp.float32) * 0.1,
        "conv_b": jnp.zeros((dim,), jnp.float32),
        # policy 1x1 conv: Conv2d(dim, 1, 1)  (the "last Conv2d" -> in_channels = dim)
        "wp": jax.random.normal(keys[1], (1, dim), jnp.float32) * 0.1,
        "bp": jnp.zeros((1,), jnp.float32),
        # project: Linear(dim,4d) -> ReLU -> Linear(4d,4d) -> ReLU -> Linear(4d,1)
        "w1": jax.random.normal(keys[2], (hidden, dim), jnp.float32) * 0.1,
        "b1": jnp.zeros((hidden, 1), jnp.float32),
        "w2": jax.random.normal(keys[3], (hidden, hidden), jnp.float32) * 0.1,
        "b2": jnp.zeros((hidden, 1), jnp.float32),
        "w3": jax.random.normal(keys[4], (1, hidden), jnp.float32) * 0.1,
        "b3": jnp.zeros((1,), jnp.float32),
    }


if __name__ == "__main__":
    B, C_IN, H, W = 2, 4, 16, 16
    DIM = 32                                   # in_channels of the last Conv2d

    params = make_params(C_IN, DIM, widen_factor=4)
    x = jax.random.normal(jax.random.PRNGKey(0), (B, C_IN, H, W), jnp.float32)

    prob_out, value_out = jax.jit(value_wrapper_forward)(x, params)
    jax.block_until_ready((prob_out, value_out))

    assert prob_out.shape == (B, H * W)
    assert value_out.shape == (B,)

    # Cross-check the fused head against a pure-JAX reference on the same feat.
    feat = jax.nn.relu(
        lax.conv_general_dilated(
            x, params["conv_w"], window_strides=(1, 1), padding="SAME",
            dimension_numbers=("NCHW", "OIHW", "NCHW"),
        ) + params["conv_b"][None, :, None, None]
    ).reshape(B, DIM, H * W)
    prob_expect, value_expect = value_head_reference(feat, params)
    assert jnp.allclose(prob_out, prob_expect, atol=1e-3, rtol=1e-3)
    assert jnp.allclose(value_out, value_expect, atol=1e-3, rtol=1e-3)

    print("KERNEL_OK")
</pallas_src>

<mosaic_0001>
module attributes {stable_mosaic.version = 11 : i64} {
  func.func @value_head_kernel(%arg0: i32, %arg1: i32, %arg2: memref<1x32x256xbf16, #tpu.memory_space<vmem>>, %arg3: memref<1x32xbf16, #tpu.memory_space<vmem>>, %arg4: memref<1xf32, #tpu.memory_space<smem>>, %arg5: memref<128x32xf32, #tpu.memory_space<vmem>>, %arg6: memref<128x1xf32, #tpu.memory_space<vmem>>, %arg7: memref<128x128xf32, #tpu.memory_space<vmem>>, %arg8: memref<128x1xf32, #tpu.memory_space<vmem>>, %arg9: memref<1x128xf32, #tpu.memory_space<vmem>>, %arg10: memref<1xf32, #tpu.memory_space<smem>>, %arg11: memref<1x1x256xf32, #tpu.memory_space<vmem>>, %arg12: memref<1x1x128xf32, #tpu.memory_space<vmem>>, %arg13: memref<32x1xf32, #tpu.memory_space<vmem>>) attributes {dimension_semantics = [#tpu.dimension_semantics<parallel>, #tpu.dimension_semantics<arbitrary>], iteration_bounds = array<i64: 2, 1>, scalar_prefetch = 0 : i64, scratch_operands = 1 : i64, tpu.core_type = #tpu.core_type<tc>, window_params = [{transform_indices = @transform_0, window_bounds = array<i64: 1, 32, 256>}, {pipeline_mode = #tpu.pipeline_mode<synchronous>, transform_indices = @transform_1, window_bounds = array<i64: 1, 32>}, {transform_indices = @transform_2, window_bounds = array<i64: 1>}, {pipeline_mode = #tpu.pipeline_mode<synchronous>, transform_indices = @transform_3, window_bounds = array<i64: 128, 32>}, {pipeline_mode = #tpu.pipeline_mode<synchronous>, transform_indices = @transform_4, window_bounds = array<i64: 128, 1>}, {pipeline_mode = #tpu.pipeline_mode<synchronous>, transform_indices = @transform_5, window_bounds = array<i64: 128, 128>}, {pipeline_mode = #tpu.pipeline_mode<synchronous>, transform_indices = @transform_6, window_bounds = array<i64: 128, 1>}, {pipeline_mode = #tpu.pipeline_mode<synchronous>, transform_indices = @transform_7, window_bounds = array<i64: 1, 128>}, {transform_indices = @transform_8, window_bounds = array<i64: 1>}, {transform_indices = @transform_9, window_bounds = array<i64: 1, 1, 256>}, {transform_indices = @transform_10, window_bounds = array<i64: 1, 1, 128>}]} {
    %c0_i32 = arith.constant 0 : i32
    %0 = arith.cmpi eq, %arg1, %c0_i32 : i32
    %1 = arith.extui %0 : i1 to i32
    %c0_i32_0 = arith.constant 0 : i32
    %2 = arith.cmpi ne, %1, %c0_i32_0 : i32
    scf.if %2 {
      %cst_17 = arith.constant 0.000000e+00 : f32
      %21 = vector.broadcast %cst_17 : f32 to vector<32x1xf32>
      %c0_18 = arith.constant 0 : index
      %c0_19 = arith.constant 0 : index
      %22 = vector.load %arg13[%c0_18, %c0_19] : memref<32x1xf32, #tpu.memory_space<vmem>>, vector<32x1xf32>
      tpu.vector_store %arg13[%c0_18, %c0_19], %21 {strides = array<i32>} : memref<32x1xf32, #tpu.memory_space<vmem>>, vector<32x1xf32>,
    } else {
    }
    %c0 = arith.constant 0 : index
    %c0_1 = arith.constant 0 : index
    %c0_2 = arith.constant 0 : index
    %3 = vector.load %arg2[%c0, %c0_1, %c0_2] : memref<1x32x256xbf16, #tpu.memory_space<vmem>>, vector<1x32x256xbf16>
    %4 = vector.shape_cast %3 : vector<1x32x256xbf16> to vector<32x256xbf16>
    %c0_3 = arith.constant 0 : index
    %c0_4 = arith.constant 0 : index
    %5 = vector.load %arg3[%c0_3, %c0_4] : memref<1x32xbf16, #tpu.memory_space<vmem>>, vector<1x32xbf16>
    %cst = arith.constant dense<0.000000e+00> : vector<1x256xf32>
    %6 = tpu.matmul %5, %4, %cst {dimension_numbers = #tpu.dot_dimension_numbers<[1], [0], [0], [1], [0, 0, 1, 1], [], []>} : vector<1x32xbf16>, vector<32x256xbf16>, vector<1x256xf32> -> vector<1x256xf32>
    %c0_5 = arith.constant 0 : index
    %7 = memref.load %arg4[%c0_5] : memref<1xf32, #tpu.memory_space<smem>>
    %8 = vector.broadcast %7 : f32 to vector<1x256xf32>
    %9 = arith.addf %6, %8 : vector<1x256xf32>
    %c0_6 = arith.constant 0 : index
    %c0_7 = arith.constant 0 : index
    %c0_8 = arith.constant 0 : index
    %10 = vector.load %arg11[%c0_6, %c0_7, %c0_8] : memref<1x1x256xf32, #tpu.memory_space<vmem>>, vector<1x1x256xf32>
    %11 = vector.shape_cast %10 : vector<1x1x256xf32> to vector<1x256xf32>
    %12 = vector.shape_cast %9 : vector<1x256xf32> to vector<1x1x256xf32>
    tpu.vector_store %arg11[%c0_6, %c0_7, %c0_8], %12 {strides = array<i32>} : memref<1x1x256xf32, #tpu.memory_space<vmem>>, vector<1x1x256xf32>,
    %cst_9 = arith.constant 1.000000e+00 : bf16
    %13 = vector.broadcast %cst_9 : bf16 to vector<256x1xbf16>
    %c0_10 = arith.constant 0 : index
    %c0_11 = arith.constant 0 : index
    %14 = vector.load %arg13[%c0_10, %c0_11] : memref<32x1xf32, #tpu.memory_space<vmem>>, vector<32x1xf32>
    %cst_12 = arith.constant dense<0.000000e+00> : vector<32x1xf32>
    %15 = tpu.matmul %4, %13, %cst_12 {dimension_numbers = #tpu.dot_dimension_numbers<[1], [0], [0], [1], [0, 0, 1, 1], [], []>} : vector<32x256xbf16>, vector<256x1xbf16>, vector<32x1xf32> -> vector<32x1xf32>
    %16 = arith.addf %14, %15 : vector<32x1xf32>
    %c0_13 = arith.constant 0 : index
    %c0_14 = arith.constant 0 : index
    %17 = vector.load %arg13[%c0_13, %c0_14] : memref<32x1xf32, #tpu.memory_space<vmem>>, vector<32x1xf32>
    tpu.vector_store %arg13[%c0_13, %c0_14], %16 {strides = array<i32>} : memref<32x1xf32, #tpu.memory_space<vmem>>, vector<32x1xf32>,
    %c0_i32_15 = arith.constant 0 : i32
    %18 = arith.cmpi eq, %arg1, %c0_i32_15 : i32
    %19 = arith.extui %18 : i1 to i32
    %c0_i32_16 = arith.constant 0 : i32
    %20 = arith.cmpi ne, %19, %c0_i32_16 : i32
    scf.if %20 {
      %c0_17 = arith.constant 0 : index
      %c0_18 = arith.constant 0 : index
      %21 = vector.load %arg13[%c0_17, %c0_18] : memref<32x1xf32, #tpu.memory_space<vmem>>, vector<32x1xf32>
      %cst_19 = arith.constant 3.906250e-03 : f32
      %22 = vector.broadcast %cst_19 : f32 to vector<32x1xf32>
      %23 = arith.mulf %21, %22 : vector<32x1xf32>
      %c0_20 = arith.constant 0 : index
      %c0_21 = arith.constant 0 : index
      %24 = vector.load %arg5[%c0_20, %c0_21] : memref<128x32xf32, #tpu.memory_space<vmem>>, vector<128x32xf32>
      %cst_22 = arith.constant dense<0.000000e+00> : vector<128x1xf32>
      %25 = tpu.matmul %24, %23, %cst_22 {dimension_numbers = #tpu.dot_dimension_numbers<[1], [0], [0], [1], [0, 0, 1, 1], [], []>} : vector<128x32xf32>, vector<32x1xf32>, vector<128x1xf32> -> vector<128x1xf32>
      %c0_23 = arith.constant 0 : index
      %c0_24 = arith.constant 0 : index
      %26 = vector.load %arg6[%c0_23, %c0_24] : memref<128x1xf32, #tpu.memory_space<vmem>>, vector<128x1xf32>
      %27 = arith.addf %25, %26 : vector<128x1xf32>
      %cst_25 = arith.constant 0.000000e+00 : f32
      %28 = vector.broadcast %cst_25 : f32 to vector<128x1xf32>
      %29 = arith.maximumf %27, %28 : vector<128x1xf32>
      %c0_26 = arith.constant 0 : index
      %c0_27 = arith.constant 0 : index
      %30 = vector.load %arg7[%c0_26, %c0_27] : memref<128x128xf32, #tpu.memory_space<vmem>>, vector<128x128xf32>
      %cst_28 = arith.constant dense<0.000000e+00> : vector<128x1xf32>
      %31 = tpu.matmul %30, %29, %cst_28 {dimension_numbers = #tpu.dot_dimension_numbers<[1], [0], [0], [1], [0, 0, 1, 1], [], []>} : vector<128x128xf32>, vector<128x1xf32>, vector<128x1xf32> -> vector<128x1xf32>
      %c0_29 = arith.constant 0 : index
      %c0_30 = arith.constant 0 : index
      %32 = vector.load %arg8[%c0_29, %c0_30] : memref<128x1xf32, #tpu.memory_space<vmem>>, vector<128x1xf32>
      %33 = arith.addf %31, %32 : vector<128x1xf32>
      %cst_31 = arith.constant 0.000000e+00 : f32
      %34 = vector.broadcast %cst_31 : f32 to vector<128x1xf32>
      %35 = arith.maximumf %33, %34 : vector<128x1xf32>
      %c0_32 = arith.constant 0 : index
      %c0_33 = arith.constant 0 : index
      %36 = vector.load %arg9[%c0_32, %c0_33] : memref<1x128xf32, #tpu.memory_space<vmem>>, vector<1x128xf32>
      %cst_34 = arith.constant dense<0.000000e+00> : vector<1x1xf32>
      %37 = tpu.matmul %36, %35, %cst_34 {dimension_numbers = #tpu.dot_dimension_numbers<[1], [0], [0], [1], [0, 0, 1, 1], [], []>} : vector<1x128xf32>, vector<128x1xf32>, vector<1x1xf32> -> vector<1x1xf32>
      %c0_35 = arith.constant 0 : index
      %38 = memref.load %arg10[%c0_35] : memref<1xf32, #tpu.memory_space<smem>>
      %39 = vector.broadcast %38 : f32 to vector<1x1xf32>
      %40 = arith.addf %37, %39 : vector<1x1xf32>
      %41 = vector.shape_cast %40 : vector<1x1xf32> to vector<1x1x1xf32>
      %42 = vector.shape_cast %41 : vector<1x1x1xf32> to vector<1x1x1xf32>
      %43 = vector.broadcast %42 : vector<1x1x1xf32> to vector<1x1x128xf32>
      %c0_36 = arith.constant 0 : index
      %c0_37 = arith.constant 0 : index
      %c0_38 = arith.constant 0 : index
      %44 = vector.load %arg12[%c0_36, %c0_37, %c0_38] : memref<1x1x128xf32, #tpu.memory_space<vmem>>, vector<1x1x128xf32>
      tpu.vector_store %arg12[%c0_36, %c0_37, %c0_38], %43 {strides = array<i32>} : memref<1x1x128xf32, #tpu.memory_space<vmem>>, vector<1x1x128xf32>,
    } else {
    }
    return
  }
  func.func @transform_0(%arg0: i32, %arg1: i32) -> (i32, i32, i32) {
    %c0_i32 = arith.constant 0 : i32
    %c0_i32_0 = arith.constant 0 : i32
    return %arg0, %c0_i32, %arg1 : i32, i32, i32
  }
  func.func @transform_1(%arg0: i32, %arg1: i32) -> (i32, i32) {
    %c0_i32 = arith.constant 0 : i32
    %c0_i32_0 = arith.constant 0 : i32
    %c0_i32_1 = arith.constant 0 : i32
    return %c0_i32, %c0_i32_0 : i32, i32
  }
  func.func @transform_2(%arg0: i32, %arg1: i32) -> i32 {
    %c0_i32 = arith.constant 0 : i32
    %c0_i32_0 = arith.constant 0 : i32
    return %c0_i32 : i32
  }
  func.func @transform_3(%arg0: i32, %arg1: i32) -> (i32, i32) {
    %c0_i32 = arith.constant 0 : i32
    %c0_i32_0 = arith.constant 0 : i32
    %c0_i32_1 = arith.constant 0 : i32
    return %c0_i32, %c0_i32_0 : i32, i32
  }
  func.func @transform_4(%arg0: i32, %arg1: i32) -> (i32, i32) {
    %c0_i32 = arith.constant 0 : i32
    %c0_i32_0 = arith.constant 0 : i32
    %c0_i32_1 = arith.constant 0 : i32
    return %c0_i32, %c0_i32_0 : i32, i32
  }
  func.func @transform_5(%arg0: i32, %arg1: i32) -> (i32, i32) {
    %c0_i32 = arith.constant 0 : i32
    %c0_i32_0 = arith.constant 0 : i32
    %c0_i32_1 = arith.constant 0 : i32
    return %c0_i32, %c0_i32_0 : i32, i32
  }
  func.func @transform_6(%arg0: i32, %arg1: i32) -> (i32, i32) {
    %c0_i32 = arith.constant 0 : i32
    %c0_i32_0 = arith.constant 0 : i32
    %c0_i32_1 = arith.constant 0 : i32
    return %c0_i32, %c0_i32_0 : i32, i32
  }
  func.func @transform_7(%arg0: i32, %arg1: i32) -> (i32, i32) {
    %c0_i32 = arith.constant 0 : i32
    %c0_i32_0 = arith.constant 0 : i32
    %c0_i32_1 = arith.constant 0 : i32
    return %c0_i32, %c0_i32_0 : i32, i32
  }
  func.func @transform_8(%arg0: i32, %arg1: i32) -> i32 {
    %c0_i32 = arith.constant 0 : i32
    %c0_i32_0 = arith.constant 0 : i32
    return %c0_i32 : i32
  }
  func.func @transform_9(%arg0: i32, %arg1: i32) -> (i32, i32, i32) {
    %c0_i32 = arith.constant 0 : i32
    %c0_i32_0 = arith.constant 0 : i32
    return %arg0, %c0_i32, %arg1 : i32, i32, i32
  }
  func.func @transform_10(%arg0: i32, %arg1: i32) -> (i32, i32, i32) {
    %c0_i32 = arith.constant 0 : i32
    %c0_i32_0 = arith.constant 0 : i32
    %c0_i32_1 = arith.constant 0 : i32
    return %arg0, %c0_i32, %c0_i32_0 : i32, i32, i32
  }
}

</mosaic_0001>

<bundles_post_ra>
// kernel: value_wrapper_forward.1
= control target key start
LH: loop header
LB: loop body
LE: loop exit
PB: predicated region body
PF: predicated region fallthrough
CT: control target
= control target key end

     0   :  { %s1650_s17 = smov 0   ;;  %s1652_s18 = smov 0   ;;  %s1927_s0 = inlined_call_operand.vmem [shape: bf16[2,32,256], index: 0, kind: input, shape index: {}]   ;;  %s1928_s1 = inlined_call_operand.vmem [shape: bf16[1,32], index: 1, kind: input, shape index: {}]   ;;  %s1929_s2 = inlined_call_operand.<no memory space> [shape: f32[1], index: 2, kind: input, shape index: {}]   ;;  %s1930_s3 = inlined_call_operand.vmem [shape: f32[128,32], index: 3, kind: input, shape index: {}]   ;;  %s1931_s4 = inlined_call_operand.vmem [shape: f32[128,1], index: 4, kind: input, shape index: {}]   ;;  %s1932_s5 = inlined_call_operand.vmem [shape: f32[128,128], index: 5, kind: input, shape index: {}]   ;;  %s1933_s6 = inlined_call_operand.vmem [shape: f32[128,1], index: 6, kind: input, shape index: {}]   ;;  %s1934_s7 = inlined_call_operand.vmem [shape: f32[1,128], index: 7, kind: input, shape index: {}]   ;;  %s1935_s8 = inlined_call_operand.<no memory space> [shape: f32[1], index: 8, kind: input, shape index: {}]   ;;  %s1936_s9 = inlined_call_operand.vmem [shape: f32[2,1,256], index: 9, kind: output, shape index: {0}]   ;;  %s1937_s10 = inlined_call_operand.vmem [shape: f32[2,1,128], index: 10, kind: output, shape index: {1}]  }
   0x1   :  { %16 = sst [smem:[#allocation3]] %s1929_s2  ;;  %s1654_s19 = smov 0  }
   0x2   :  { %17 = sst [smem:[#allocation4]] %s1935_s8 }
   0x3 LB: > { %s35_s2 = sadd.s32 1, %s1577_s18  ;;  %p1210_p0 = scmp.ge.s32.totalorder %s1581_s19, 1  ;;  %s1581_s19 = sphi %s1654_s19, %s23_s19   ;;  %s1577_s18 = sphi %s1652_s18, %s1939_s18   ;;  %s1573_s17 = sphi %s1650_s17, %s1938_s17  }
   0x4   : > { %p37_p1 = scmp.ge.s32.totalorder %s35_s2, 2  ;;  %p338_p2 = scmp.lt.s32.totalorder %s1581_s19, 3 }
   0x6   : > { %s1941_s2 = smov (%p37_p1, %s35_s2), 0  ;;  %p339_p3 = pnand %p1210_p0, %p338_p2 }
   0x7   : > { %p387_p4 = scmp.lt.s32.totalorder (!%p339_p3), %s1573_s17, 1  ;;  %v1583_v0 = vmov (!%p339_p3), 0   ;;  %v423_v5 = vld [vmem:[%s1928_s1] sm:$0x1] (!%p339_p3)  ;;  %vm446_vm0 = vcmask (!%p339_p3), 261120   ;;  %vm414_vm1 = vcmask (!%p339_p3), 7168   ;;  %v497_v11 = vlaneseq (!%p339_p3) }
   0x8   : > { %342 = sbr.rel (%p339_p3) target bundleno = 1146 (0x47a), region = 56  ;;  %482 = vmatprep.mubr.bf16.mxu1 (!%p339_p3), %v1583_v0  ;;  %1552 = vset.pattern.permute.xlu0 (!%p339_p3), %v1583_v0  ;;  %v1584_v6 = vmov (!%p339_p3), 1065369472   ;;  %v1585_v7 = vmov (!%p339_p3), 0.0   ;;  %v587_v8 = vld [vmem:[%s1930_s3] sm:$0xff] (!%p339_p3)  ;;  %s424_s27 = sld [smem:[#allocation3]] (!%p339_p3) }
   0x9   : > { %415 = vst.msk [vmem:[#allocation2] sm:$0xff] (!%p339_p3), %vm414_vm1, %v1585_v7  ;;  %416 = vst.msk [vmem:[#allocation2 + $0x8] sm:$0xff] (!%p339_p3), %vm414_vm1, %v1585_v7  ;;  %1343 = vmatprep.mubr.msk.f32.mxu0 (!%p339_p3), %vm446_vm0, %v587_v8  ;;  %v1586_v9 = vmov (!%p339_p3), 1966171168   ;;  %v498_v14 = vshrl.u32 (!%p339_p3), %v497_v11, 7  ;;  %vm511_vm2 = vcmp.lt.s32.totalorder (!%p339_p3), %v497_v11, 256 }
   0xa   : > { %417 = vst.msk [vmem:[#allocation2 + $0x10] sm:$0xff] (!%p339_p3), %vm414_vm1, %v1585_v7  ;;  %418 = vst.msk [vmem:[#allocation2 + $0x18] sm:$0xff] (!%p339_p3), %vm414_vm1, %v1585_v7  ;;  %v495_v10 = vunpack.c.l.s4 (!%p339_p3), %v1586_v9  ;;  %v588_v55 = vld [vmem:[%s1930_s3 + $0x8] sm:$0xff] (!%p339_p3)  ;;  %v589_v56 = vld [vmem:[%s1930_s3 + $0x10] sm:$0xff] (!%p339_p3)  ;;  %vm1588_vm3 = vmmov (!%p339_p3), 0   ;;  %s1022_s14 = sld [smem:[#allocation4]] (!%p339_p3) }
   0xb   : > { %v590_v57 = vld [vmem:[%s1930_s3 + $0x18] sm:$0xff] (!%p339_p3)  ;;  %v591_v58 = vld [vmem:[%s1930_s3 + $0x20] sm:$0xff] (!%p339_p3)  ;;  %v592_v59 = vld [vmem:[%s1930_s3 + $0x28] sm:$0xff] (!%p339_p3) }
   0xc   : > { %v496_v13 = vunpack.c.0.s8 (!%p339_p3), %v495_v10  ;;  %v593_v60 = vld [vmem:[%s1930_s3 + $0x30] sm:$0xff] (!%p339_p3)  ;;  %v594_v61 = vld [vmem:[%s1930_s3 + $0x38] sm:$0xff] (!%p339_p3)  ;;  %v595_v62 = vld [vmem:[%s1930_s3 + $0x40] sm:$0xff] (!%p339_p3) }
   0xd   : > { %v596_v63 = vld [vmem:[%s1930_s3 + $0x48] sm:$0xff] (!%p339_p3)  ;;  %v597_v0 = vld [vmem:[%s1930_s3 + $0x50] sm:$0xff] (!%p339_p3)  ;;  %v603_v9 = vld [vmem:[%s1931_s4] sm:$0xff] (!%p339_p3) }
   0xe   : > { %v425_v12 = vstv (!%p339_p3), %s424_s27  ;;  %v499_v19 = vsub.s32 (!%p339_p3), %v496_v13, %v498_v14  ;;  %v604_v8 = vld [vmem:[%s1931_s4 + $0x8] sm:$0xff] (!%p339_p3)  ;;  %v606_v14 = vld [vmem:[%s1931_s4 + $0x18] sm:$0xff] (!%p339_p3) }
   0xf   : > { %s1943_s17 = smov (!%p387_p4, %s1573_s17), 1 }
  0x10   : > { %s1237_s8 = sshll.u32 %s1943_s17, 5  ;;  %s1213_s28 = sshll.u32 %s1943_s17, 1  ;;  %v514_v26 = vld [vmem:[#allocation2] sm:$0xff]  ;;  %v515_v30 = vld [vmem:[#allocation2 + $0x8] sm:$0xff] }
  0x11   : > { %s394_s22 = scalar_lea.vmem %s1927_s0, %s1237_s8  ;;  %s403_s11 = scalar_lea.vmem %s1936_s9, %s1213_s28  ;;  %v516_v36 = vld [vmem:[#allocation2 + $0x10] sm:$0xff]  ;;  %v517_v40 = vld [vmem:[#allocation2 + $0x18] sm:$0xff] }
  0x12   : > { %v1553_v1 = vld [vmem:[%s394_s22 + $0x4] ss:$8 sps:$4 sm:$0xff]   ;;  %v1555_v2 = vld [vmem:[%s394_s22] ss:$8 sps:$4 sm:$0xff]   ;;  %v1556_v3 = vld [vmem:[%s394_s22 + $0x14] ss:$8 sps:$4 sm:$0xff]   ;;  %s407_s8 = scalar_lea.vmem %s1937_s10, %s1943_s17 }
  0x13   : > { %450 = vmatprep.subr.bf16.mxu1 %v1553_v1  ;;  %v1558_v4 = vld [vmem:[%s394_s22 + $0x10] ss:$8 sps:$4 sm:$0xff]  }
  0x14   : > { %451 = vmatpush1.bf16.msra.mxu1 %v1555_v2 }
  0x15   : > { %452 = vmatprep.subr.bf16.mxu1 %v1556_v3 }
  0x18   : > { %453 = vmatpush1.bf16.msra.mxu1 %v1558_v4 }
  0x19   : > { %1238 = vmatprep.subr.bf16.mxu1 %v1584_v6 }
  0x1b   : > { %1218 = vmatmul.mubr.msk.bf16.vlgmr.msra.gmra.mrb[0].mxu1 %vm446_vm0, %v423_v5  ;;  %v602_v5 = vld [vmem:[%s1930_s3 + $0x78] sm:$0xff] }
  0x1c   : > { %1239 = vmatpush3.bf16.msra.mxu1 %v1584_v6  ;;  %550 = vmatprep.mubr.bf16.mxu1 %v1553_v1  ;;  %v598_v1 = vld [vmem:[%s1930_s3 + $0x58] sm:$0xff] }
  0x1d   : > { %1240 = vmatprep.subr.bf16.mxu1 %v1584_v6 }
  0x20   : > { %1241 = vmatpush3.bf16.msra.mxu1 %v1584_v6 }
  0x21   : > { %1242 = vmatprep.subr.bf16.mxu1 %v1584_v6 }
  0x24   : > { %1243 = vmatpush3.bf16.msra.mxu1 %v1584_v6 }
  0x25   : > { %1244 = vmatprep.subr.bf16.mxu1 %v1584_v6 }
  0x28   : > { %1245 = vmatpush3.bf16.msra.mxu1 %v1584_v6 }
  0x29   : > { %1246 = vmatprep.subr.bf16.mxu1 %v1584_v6 }
  0x2c   : > { %1247 = vmatpush3.bf16.msra.mxu1 %v1584_v6 }
  0x2d   : > { %1248 = vmatprep.subr.bf16.mxu1 %v1584_v6 }
  0x30   : > { %1249 = vmatpush3.bf16.msra.mxu1 %v1584_v6 }
  0x31   : > { %1250 = vmatprep.subr.bf16.mxu1 %v1584_v6 }
  0x34   : > { %1251 = vmatpush3.bf16.msra.mxu1 %v1584_v6 }
  0x35   : > { %1252 = vmatprep.subr.bf16.mxu1 %v1584_v6 }
  0x38   : > { %1253 = vmatpush3.bf16.msra.mxu1 %v1584_v6  ;;  %v828_v6 = vld [vmem:[%s1932_s5] sm:$0xff] }
  0x3b   : > { %551 = vmatmul.mubr.bf16.vlgmr.msra.gmra.mrb[4].mxu1 %v1555_v2  ;;  %v599_v2 = vld [vmem:[%s1930_s3 + $0x60] sm:$0xff] }
  0x3c   : > { %558 = vmatprep.mubr.bf16.mxu1 %v1556_v3  ;;  %v600_v3 = vld [vmem:[%s1930_s3 + $0x68] sm:$0xff] }
  0x43   : > { %559 = vmatmul.mubr.bf16.gmra.mrb[8].mxu1 %v1558_v4  ;;  %v601_v4 = vld [vmem:[%s1930_s3 + $0x70] sm:$0xff] }
  0x44   : > { %1455 = vmatprep.mubr.msk.f32.mxu1 %vm1588_vm3, %v1585_v7  ;;  %v846_v7 = vld [vmem:[%s1933_s6 + $0x10] sm:$0xff] }
  0xee   : > { %v484_v15 = vpop.f32.mrb[0].mxu1 }
  0xef   : > { %v485_v16 = vadd.f32 %v484_v15, %v425_v12  ;;  %v486_v17 = vpop.f32.mrb[1].mxu1 }
  0xf0   : > { %v487_v18 = vadd.f32 %v486_v17, %v425_v12  ;;  %v488_v20 = vpop.f32.mrb[2].mxu1 }
  0xf1   : > { %v489_v21 = vpop.f32.mrb[3].mxu1 }
  0xf2   : > { %v493_v22 = vcombine.low %v485_v16, %v487_v18  ;;  %v605_v16 = vld [vmem:[%s1931_s4 + $0x10] sm:$0xff] }
  0xf4   : > { %v500_v23 = vrot.slane %v493_v22, %v499_v19 }
  0xf6   : > { %v507_v24 = vrot.slane %v500_v23, %v499_v19  ;;  %v608_v23 = vld [vmem:[%s1931_s4 + $0x28] sm:$0xff] }
  0xf8   : > { %513 = vst.msk [vmem:[%s403_s11] sm:$0x3] %vm511_vm2, %v507_v24 }
 0x10e   : > { %v1254_v25 = vpop.f32.mrb[4].mxu1 }
 0x10f   : > { %v1255_v27 = vpop.f32.mrb[5].mxu1 }
 0x110   : > { %v1256_v28 = vadd.f32 %v1255_v27, %v1254_v25  ;;  %v1257_v29 = vpop.f32.mrb[6].mxu1  ;;  %v607_v25 = vld [vmem:[%s1931_s4 + $0x20] sm:$0xff] }
 0x111   : > { %v1258_v31 = vpop.f32.mrb[7].mxu1 }
 0x112   : > { %v567_v32 = vadd.f32 %v1256_v28, %v514_v26  ;;  %v1259_v33 = vadd.f32 %v1258_v31, %v1257_v29 }
 0x114   : > { %572 = vst.msk [vmem:[#allocation2] sm:$0xff] %vm414_vm1, %v567_v32  ;;  %v568_v34 = vadd.f32 %v1259_v33, %v515_v30  ;;  %v610_v32 = vld [vmem:[%s1931_s4 + $0x38] sm:$0xff] }
 0x116   : > { %573 = vst.msk [vmem:[#allocation2 + $0x8] sm:$0xff] %vm414_vm1, %v568_v34  ;;  %v1260_v35 = vpop.f32.mrb[8].mxu1  ;;  %v609_v34 = vld [vmem:[%s1931_s4 + $0x30] sm:$0xff] }
 0x117   : > { %v1261_v37 = vpop.f32.mrb[9].mxu1 }
 0x118   : > { %v1262_v38 = vadd.f32 %v1261_v37, %v1260_v35  ;;  %v1263_v39 = vpop.f32.mrb[10].mxu1 }
 0x119   : > { %v1264_v41 = vpop.f32.mrb[11].mxu1 }
 0x11a   : > { %v569_v42 = vadd.f32 %v1262_v38, %v516_v36  ;;  %v1265_v43 = vadd.f32 %v1264_v41, %v1263_v39  ;;  %v612_v41 = vld [vmem:[%s1931_s4 + $0x48] sm:$0xff] }
 0x11b   : > { %v579_v44 = vld [vmem:[#allocation2] sm:$0xff] }
 0x11c   : > { %574 = vst.msk [vmem:[#allocation2 + $0x10] sm:$0xff] %vm414_vm1, %v569_v42  ;;  %v570_v45 = vadd.f32 %v1265_v43, %v517_v40  ;;  %v583_v47 = vmul.f32 0.00390625, %v579_v44  ;;  %v611_v43 = vld [vmem:[%s1931_s4 + $0x40] sm:$0xff] }
 0x11d   : > { %v580_v46 = vld [vmem:[#allocation2 + $0x8] sm:$0xff] }
 0x11e   : > { %575 = vst.msk [vmem:[#allocation2 + $0x18] sm:$0xff] %vm414_vm1, %v570_v45  ;;  %v584_v48 = vmul.f32 0.00390625, %v580_v46 }
 0x120   : > { %v1458_v49 = vpack.c.bf16 %v584_v48, %v583_v47 }
 0x122   : > { %1459 = vmatprep.subr.bf16.mxu0 %v1458_v49 }
 0x123   : > { %1461 = vmatpush3.bf16.msra.mxu0 %v1458_v49  ;;  %v581_v50 = vld [vmem:[#allocation2 + $0x10] sm:$0xff] }
 0x124   : > { %v585_v52 = vmul.f32 0.00390625, %v581_v50  ;;  %v614_v50 = vld [vmem:[%s1931_s4 + $0x58] sm:$0xff] }
 0x125   : > { %v582_v51 = vld [vmem:[#allocation2 + $0x18] sm:$0xff] }
 0x126   : > { %v586_v53 = vmul.f32 0.00390625, %v582_v51 }
 0x128   : > { %v1462_v54 = vpack.c.bf16 %v586_v53, %v585_v52  ;;  %v613_v52 = vld [vmem:[%s1931_s4 + $0x50] sm:$0xff] }
 0x12a   : > { %1463 = vmatprep.subr.bf16.mxu0 %v1462_v54 }
 0x12b   : > { %1465 = vmatpush3.bf16.msra.mxu0 %v1462_v54 }
 0x12e   : > { %1344 = vmatmul.mubr.msk.f32.vlgmr.msra.gmra.mrb[0].mxu0 %vm446_vm0, %v588_v55 }
 0x12f   : > { %1346 = vmatprep.mubr.msk.f32.mxu0 %vm446_vm0, %v589_v56 }
 0x132   : > { %1347 = vmatmul.mubr.msk.f32.gmra.mrb[2].mxu0 %vm446_vm0, %v590_v57 }
 0x133   : > { %1349 = vmatprep.mubr.msk.f32.mxu0 %vm446_vm0, %v591_v58 }
 0x136   : > { %1350 = vmatmul.mubr.msk.f32.gmra.mrb[4].mxu0 %vm446_vm0, %v592_v59  ;;  %v616_v59 = vld [vmem:[%s1931_s4 + $0x68] sm:$0xff] }
 0x137   : > { %1352 = vmatprep.mubr.msk.f32.mxu0 %vm446_vm0, %v593_v60 }
 0x13a   : > { %1353 = vmatmul.mubr.msk.f32.gmra.mrb[6].mxu0 %vm446_vm0, %v594_v61  ;;  %v615_v61 = vld [vmem:[%s1931_s4 + $0x60] sm:$0xff] }
 0x13b   : > { %1355 = vmatprep.mubr.msk.f32.mxu0 %vm446_vm0, %v595_v62 }
 0x13e   : > { %1356 = vmatmul.mubr.msk.f32.gmra.mrb[8].mxu0 %vm446_vm0, %v596_v63 }
 0x13f   : > { %1358 = vmatprep.mubr.msk.f32.mxu0 %vm446_vm0, %v597_v0 }
 0x142   : > { %1359 = vmatmul.mubr.msk.f32.gmra.mrb[10].mxu0 %vm446_vm0, %v598_v1 }
 0x143   : > { %1361 = vmatprep.mubr.msk.f32.mxu0 %vm446_vm0, %v599_v2 }
 0x146   : > { %1362 = vmatmul.mubr.msk.f32.gmra.mrb[12].mxu0 %vm446_vm0, %v600_v3 }
 0x147   : > { %1364 = vmatprep.mubr.msk.f32.mxu0 %vm446_vm0, %v601_v4  ;;  %v618_v4 = vld [vmem:[%s1931_s4 + $0x78] sm:$0xff] }
 0x14a   : > { %1365 = vmatmul.mubr.msk.f32.gmra.mrb[14].mxu0 %vm446_vm0, %v602_v5 }
 0x14b   : > { %1399 = vmatprep.mubr.f32.mxu0 %v828_v6  ;;  %v617_v6 = vld [vmem:[%s1931_s4 + $0x70] sm:$0xff] }
 0x201   : > { %v1345_v10 = vpop.f32.mrb[0].mxu0 }
 0x202   : > { %v739_v11 = vadd.f32 %v1345_v10, %v604_v8  ;;  %v733_v12 = vpop.f32.mrb[1].mxu0 }
 0x203   : > { %v734_v13 = vadd.f32 %v733_v12, %v603_v9 }
 0x204   : > { %v813_v15 = vmax.f32 %v739_v11, 0.0 }
 0x205   : > { %v812_v17 = vmax.f32 %v734_v13, 0.0  ;;  %v1348_v18 = vpop.f32.mrb[2].mxu0 }
 0x206   : > { %v749_v19 = vadd.f32 %v1348_v18, %v606_v14  ;;  %v743_v20 = vpop.f32.mrb[3].mxu0  ;;  %v830_v18 = vld [vmem:[%s1932_s5 + $0x10] sm:$0xff] }
 0x207   : > { %v1466_v21 = vpack.c.bf16 %v813_v15, %v812_v17  ;;  %v744_v22 = vadd.f32 %v743_v20, %v605_v16  ;;  %v829_v17 = vld [vmem:[%s1932_s5 + $0x8] sm:$0xff]  ;;  %v832_v20 = vld [vmem:[%s1932_s5 + $0x20] sm:$0xff] }
 0x208   : > { %v815_v24 = vmax.f32 %v749_v19, 0.0  ;;  %v831_v19 = vld [vmem:[%s1932_s5 + $0x18] sm:$0xff] }
 0x209   : > { %v814_v26 = vmax.f32 %v744_v22, 0.0  ;;  %v1351_v27 = vpop.f32.mrb[4].mxu0  ;;  %1467 = vmatprep.subr.bf16.mxu0 %v1466_v21  ;;  %v834_v22 = vld [vmem:[%s1932_s5 + $0x30] sm:$0xff] }
 0x20a   : > { %v759_v28 = vadd.f32 %v1351_v27, %v608_v23  ;;  %v753_v29 = vpop.f32.mrb[5].mxu0  ;;  %1469 = vmatpush3.bf16.msra.mxu0 %v1466_v21  ;;  %v833_v21 = vld [vmem:[%s1932_s5 + $0x28] sm:$0xff]  ;;  %v835_v23 = vld [vmem:[%s1932_s5 + $0x38] sm:$0xff] }
 0x20b   : > { %v1470_v30 = vpack.c.bf16 %v815_v24, %v814_v26  ;;  %v754_v31 = vadd.f32 %v753_v29, %v607_v25  ;;  %v836_v24 = vld [vmem:[%s1932_s5 + $0x40] sm:$0xff]  ;;  %v837_v25 = vld [vmem:[%s1932_s5 + $0x48] sm:$0xff]  ;;  %v838_v26 = vld [vmem:[%s1932_s5 + $0x50] sm:$0xff] }
 0x20c   : > { %v817_v33 = vmax.f32 %v759_v28, 0.0  ;;  %v839_v27 = vld [vmem:[%s1932_s5 + $0x58] sm:$0xff]  ;;  %v840_v28 = vld [vmem:[%s1932_s5 + $0x60] sm:$0xff]  ;;  %v841_v29 = vld [vmem:[%s1932_s5 + $0x68] sm:$0xff] }
 0x20d   : > { %v816_v35 = vmax.f32 %v754_v31, 0.0  ;;  %v1354_v36 = vpop.f32.mrb[6].mxu0  ;;  %1471 = vmatprep.subr.bf16.mxu0 %v1470_v30  ;;  %v843_v31 = vld [vmem:[%s1932_s5 + $0x78] sm:$0xff] }
 0x20e   : > { %v769_v37 = vadd.f32 %v1354_v36, %v610_v32  ;;  %v763_v38 = vpop.f32.mrb[7].mxu0  ;;  %1473 = vmatpush3.bf16.msra.mxu0 %v1470_v30  ;;  %v842_v30 = vld [vmem:[%s1932_s5 + $0x70] sm:$0xff]  ;;  %v1587_v32 = vmov 0.0|0.0  }
 0x20f   : > { %v1474_v39 = vpack.c.bf16 %v817_v33, %v816_v35  ;;  %v764_v40 = vadd.f32 %v763_v38, %v609_v34  ;;  %1498 = vmatprep.subr.bf16.mxu1 %v1587_v32  ;;  %v845_v33 = vld [vmem:[%s1933_s6 + $0x8] sm:$0xff]  ;;  %v844_v34 = vld [vmem:[%s1933_s6] sm:$0xff] }
 0x210   : > { %v819_v42 = vmax.f32 %v769_v37, 0.0 }
 0x211   : > { %v818_v44 = vmax.f32 %v764_v40, 0.0  ;;  %v1357_v45 = vpop.f32.mrb[8].mxu0  ;;  %1475 = vmatprep.subr.bf16.mxu0 %v1474_v39 }
 0x212   : > { %v779_v46 = vadd.f32 %v1357_v45, %v612_v41  ;;  %v773_v47 = vpop.f32.mrb[9].mxu0  ;;  %1477 = vmatpush3.bf16.msra.mxu0 %v1474_v39  ;;  %v847_v39 = vld [vmem:[%s1933_s6 + $0x18] sm:$0xff] }
 0x213   : > { %v1478_v48 = vpack.c.bf16 %v819_v42, %v818_v44  ;;  %v774_v49 = vadd.f32 %v773_v47, %v611_v43  ;;  %v849_v47 = vld [vmem:[%s1933_s6 + $0x28] sm:$0xff] }
 0x214   : > { %v821_v51 = vmax.f32 %v779_v46, 0.0 }
 0x215   : > { %v820_v53 = vmax.f32 %v774_v49, 0.0  ;;  %v1360_v54 = vpop.f32.mrb[10].mxu0  ;;  %1479 = vmatprep.subr.bf16.mxu0 %v1478_v48  ;;  %v848_v49 = vld [vmem:[%s1933_s6 + $0x20] sm:$0xff] }
 0x216   : > { %v789_v55 = vadd.f32 %v1360_v54, %v614_v50  ;;  %v783_v56 = vpop.f32.mrb[11].mxu0  ;;  %1481 = vmatpush3.bf16.msra.mxu0 %v1478_v48 }
 0x217   : > { %v1482_v57 = vpack.c.bf16 %v821_v51, %v820_v53  ;;  %v784_v58 = vadd.f32 %v783_v56, %v613_v52  ;;  %v851_v56 = vld [vmem:[%s1933_s6 + $0x38] sm:$0xff] }
 0x218   : > { %v823_v60 = vmax.f32 %v789_v55, 0.0 }
 0x219   : > { %v822_v62 = vmax.f32 %v784_v58, 0.0  ;;  %v1363_v63 = vpop.f32.mrb[12].mxu0  ;;  %1483 = vmatprep.subr.bf16.mxu0 %v1482_v57  ;;  %v850_v58 = vld [vmem:[%s1933_s6 + $0x30] sm:$0xff] }
 0x21a   : > { %v799_v0 = vadd.f32 %v1363_v63, %v616_v59  ;;  %v793_v1 = vpop.f32.mrb[13].mxu0  ;;  %1485 = vmatpush3.bf16.msra.mxu0 %v1482_v57 }
 0x21b   : > { %v1486_v2 = vpack.c.bf16 %v823_v60, %v822_v62  ;;  %v794_v3 = vadd.f32 %v793_v1, %v615_v61  ;;  %v853_v1 = vld [vmem:[%s1933_s6 + $0x48] sm:$0xff] }
 0x21c   : > { %v825_v5 = vmax.f32 %v799_v0, 0.0 }
 0x21d   : > { %v824_v8 = vmax.f32 %v794_v3, 0.0  ;;  %v1366_v9 = vpop.f32.mrb[14].mxu0  ;;  %1487 = vmatprep.subr.bf16.mxu0 %v1486_v2  ;;  %v852_v3 = vld [vmem:[%s1933_s6 + $0x40] sm:$0xff] }
 0x21e   : > { %v809_v10 = vadd.f32 %v1366_v9, %v618_v4  ;;  %v803_v11 = vpop.f32.mrb[15].mxu0  ;;  %1489 = vmatpush3.bf16.msra.mxu0 %v1486_v2 }
 0x21f   : > { %v1490_v12 = vpack.c.bf16 %v825_v5, %v824_v8  ;;  %v804_v13 = vadd.f32 %v803_v11, %v617_v6  ;;  %v855_v11 = vld [vmem:[%s1933_s6 + $0x58] sm:$0xff] }
 0x220   : > { %v827_v14 = vmax.f32 %v809_v10, 0.0 }
 0x221   : > { %v826_v15 = vmax.f32 %v804_v13, 0.0  ;;  %1491 = vmatprep.subr.bf16.mxu0 %v1490_v12  ;;  %v854_v13 = vld [vmem:[%s1933_s6 + $0x50] sm:$0xff] }
 0x222   : > { %1493 = vmatpush3.bf16.msra.mxu0 %v1490_v12 }
 0x223   : > { %v1494_v16 = vpack.c.bf16 %v827_v14, %v826_v15 }
 0x225   : > { %1495 = vmatprep.subr.bf16.mxu0 %v1494_v16 }
 0x226   : > { %1497 = vmatpush3.bf16.msra.mxu0 %v1494_v16 }
 0x229   : > { %1400 = vmatmul.mubr.f32.vlgmr.msra.gmra.mrb[16].mxu0 %v829_v17 }
 0x22a   : > { %1402 = vmatprep.mubr.f32.mxu0 %v830_v18 }
 0x22d   : > { %1403 = vmatmul.mubr.f32.gmra.mrb[18].mxu0 %v831_v19 }
 0x22e   : > { %1405 = vmatprep.mubr.f32.mxu0 %v832_v20  ;;  %v857_v20 = vld [vmem:[%s1933_s6 + $0x68] sm:$0xff] }
 0x231   : > { %1406 = vmatmul.mubr.f32.gmra.mrb[20].mxu0 %v833_v21 }
 0x232   : > { %1408 = vmatprep.mubr.f32.mxu0 %v834_v22  ;;  %v856_v22 = vld [vmem:[%s1933_s6 + $0x60] sm:$0xff] }
 0x235   : > { %1409 = vmatmul.mubr.f32.gmra.mrb[22].mxu0 %v835_v23 }
 0x236   : > { %1411 = vmatprep.mubr.f32.mxu0 %v836_v24 }
 0x239   : > { %1412 = vmatmul.mubr.f32.gmra.mrb[24].mxu0 %v837_v25 }
 0x23a   : > { %1414 = vmatprep.mubr.f32.mxu0 %v838_v26 }
 0x23d   : > { %1415 = vmatmul.mubr.f32.gmra.mrb[26].mxu0 %v839_v27 }
 0x23e   : > { %1417 = vmatprep.mubr.f32.mxu0 %v840_v28 }
 0x241   : > { %1418 = vmatmul.mubr.f32.gmra.mrb[28].mxu0 %v841_v29  ;;  %v859_v29 = vld [vmem:[%s1933_s6 + $0x78] sm:$0xff] }
 0x242   : > { %1420 = vmatprep.mubr.f32.mxu0 %v842_v30 }
 0x245   : > { %1421 = vmatmul.mubr.f32.gmra.mrb[30].mxu0 %v843_v31  ;;  %v858_v31 = vld [vmem:[%s1933_s6 + $0x70] sm:$0xff] }
 0x2fc   : > { %v1401_v35 = vpop.f32.mrb[16].mxu0 }
 0x2fd   : > { %v932_v36 = vadd.f32 %v1401_v35, %v845_v33  ;;  %v926_v37 = vpop.f32.mrb[17].mxu0 }
 0x2fe   : > { %v927_v38 = vadd.f32 %v926_v37, %v844_v34 }
 0x2ff   : > { %v1006_v40 = vmax.f32 %v932_v36, 0.0 }
 0x300   : > { %v1005_v41 = vmax.f32 %v927_v38, 0.0  ;;  %v1404_v42 = vpop.f32.mrb[18].mxu0 }
 0x301   : > { %v942_v43 = vadd.f32 %v1404_v42, %v847_v39  ;;  %v936_v44 = vpop.f32.mrb[19].mxu0  ;;  %v1023_v42 = vstv %s1022_s14 }
 0x302   : > { %v1499_v45 = vpack.c.bf16 %v1006_v40, %v1005_v41  ;;  %v937_v46 = vadd.f32 %v936_v44, %v846_v7  ;;  %v1021_v41 = vld [vmem:[%s1934_s7] sm:$0x1] }
 0x303   : > { %v1008_v48 = vmax.f32 %v942_v43, 0.0 }
 0x304   : > { %v1007_v50 = vmax.f32 %v937_v46, 0.0  ;;  %v1407_v51 = vpop.f32.mrb[20].mxu0  ;;  %1500 = vmatpush3.bf16.msra.mxu1 %v1499_v45 }
 0x305   : > { %v952_v52 = vadd.f32 %v1407_v51, %v849_v47  ;;  %v946_v53 = vpop.f32.mrb[21].mxu0  ;;  %1501 = vmatprep.subr.bf16.mxu1 %v1587_v32 }
 0x306   : > { %v1502_v54 = vpack.c.bf16 %v1008_v48, %v1007_v50  ;;  %v947_v55 = vadd.f32 %v946_v53, %v848_v49 }
 0x307   : > { %v1010_v57 = vmax.f32 %v952_v52, 0.0 }
 0x308   : > { %v1009_v59 = vmax.f32 %v947_v55, 0.0  ;;  %v1410_v60 = vpop.f32.mrb[22].mxu0  ;;  %1503 = vmatpush3.bf16.msra.mxu1 %v1502_v54 }
 0x309   : > { %v962_v61 = vadd.f32 %v1410_v60, %v851_v56  ;;  %v956_v62 = vpop.f32.mrb[23].mxu0  ;;  %1504 = vmatprep.subr.bf16.mxu1 %v1587_v32 }
 0x30a   : > { %v1505_v63 = vpack.c.bf16 %v1010_v57, %v1009_v59  ;;  %v957_v0 = vadd.f32 %v956_v62, %v850_v58 }
 0x30b   : > { %v1012_v2 = vmax.f32 %v962_v61, 0.0 }
 0x30c   : > { %v1011_v4 = vmax.f32 %v957_v0, 0.0  ;;  %v1413_v5 = vpop.f32.mrb[24].mxu0  ;;  %1506 = vmatpush3.bf16.msra.mxu1 %v1505_v63 }
 0x30d   : > { %v972_v6 = vadd.f32 %v1413_v5, %v853_v1  ;;  %v966_v8 = vpop.f32.mrb[25].mxu0  ;;  %1507 = vmatprep.subr.bf16.mxu1 %v1587_v32 }
 0x30e   : > { %v1508_v9 = vpack.c.bf16 %v1012_v2, %v1011_v4  ;;  %v967_v10 = vadd.f32 %v966_v8, %v852_v3 }
 0x30f   : > { %v1014_v12 = vmax.f32 %v972_v6, 0.0 }
 0x310   : > { %v1013_v14 = vmax.f32 %v967_v10, 0.0  ;;  %v1416_v15 = vpop.f32.mrb[26].mxu0  ;;  %1509 = vmatpush3.bf16.msra.mxu1 %v1508_v9 }
 0x311   : > { %v982_v16 = vadd.f32 %v1416_v15, %v855_v11  ;;  %v976_v17 = vpop.f32.mrb[27].mxu0  ;;  %1510 = vmatprep.subr.bf16.mxu1 %v1587_v32 }
 0x312   : > { %v1511_v18 = vpack.c.bf16 %v1014_v12, %v1013_v14  ;;  %v977_v19 = vadd.f32 %v976_v17, %v854_v13 }
 0x313   : > { %v1016_v21 = vmax.f32 %v982_v16, 0.0 }
 0x314   : > { %v1015_v23 = vmax.f32 %v977_v19, 0.0  ;;  %v1419_v24 = vpop.f32.mrb[28].mxu0  ;;  %1512 = vmatpush3.bf16.msra.mxu1 %v1511_v18 }
 0x315   : > { %v992_v25 = vadd.f32 %v1419_v24, %v857_v20  ;;  %v986_v26 = vpop.f32.mrb[29].mxu0  ;;  %1513 = vmatprep.subr.bf16.mxu1 %v1587_v32 }
 0x316   : > { %v1514_v27 = vpack.c.bf16 %v1016_v21, %v1015_v23  ;;  %v987_v28 = vadd.f32 %v986_v26, %v856_v22 }
 0x317   : > { %v1018_v30 = vmax.f32 %v992_v25, 0.0 }
 0x318   : > { %v1017_v33 = vmax.f32 %v987_v28, 0.0  ;;  %v1422_v34 = vpop.f32.mrb[30].mxu0  ;;  %1515 = vmatpush3.bf16.msra.mxu1 %v1514_v27 }
 0x319   : > { %v1002_v35 = vadd.f32 %v1422_v34, %v859_v29  ;;  %v996_v36 = vpop.f32.mrb[31].mxu0  ;;  %1516 = vmatprep.subr.bf16.mxu1 %v1587_v32 }
 0x31a   : > { %v1517_v37 = vpack.c.bf16 %v1018_v30, %v1017_v33  ;;  %v997_v38 = vadd.f32 %v996_v36, %v858_v31 }
 0x31b   : > { %v1020_v39 = vmax.f32 %v1002_v35, 0.0 }
 0x31c   : > { %v1019_v40 = vmax.f32 %v997_v38, 0.0  ;;  %1518 = vmatpush3.bf16.msra.mxu1 %v1517_v37 }
 0x31d   : > { %1519 = vmatprep.subr.bf16.mxu1 %v1587_v32 }
 0x31e   : > { %v1520_v7 = vpack.c.bf16 %v1020_v39, %v1019_v40 }
 0x320   : > { %1521 = vmatpush3.bf16.msra.mxu1 %v1520_v7 }
 0x323   : > { %1456 = vmatmul.mubr.f32.vlgmr.msra.gmra.mrb[12].mxu1 %v1021_v41 }
 0x3f6   : > { %v1090_v43 = vpop.f32.mrb[12].mxu1 }
 0x3f7   : > { %v1091_v44 = vadd.f32 %v1090_v43, %v1023_v42  ;;  %v1457_v45 = vpop.f32.mrb[13].mxu1 }
 0x3f9   : > { %1096 = vperm.xlu0 %1552, %v1091_v44  }
 0x478   : > { %v1097_v46 = vpop.permute.xlu0 %1096 }
 0x479   : > { %1099 = vst [vmem:[%s407_s8] sm:$0x1] %v1097_v46 }
 0x47a PF: > { %s23_s19 = sadd.s32 1, %s1581_s19   ;;  %s1938_s17 = smov %s1577_s18 }
 0x47b   : > { %p20_p5 = scmp.ge.s32.totalorder %s23_s19, 4   ;;  %s1939_s18 = smov %s1941_s2 }
 0x47d   :  { %22 = sbr.rel (!%p20_p5) target bundleno = 3 (0x3), region = 106 }

</bundles_post_ra>
